<compile_context>
chip_gen: v5e
topology: v5e:2x2
jax: 0.10.0
libtpu: 0.0.40
codegen_flags: <defaults>
</compile_context>

<pallas_src>
import jax
import jax.numpy as jnp
from jax import lax
from jax.experimental import pallas as pl
from jax.experimental.pallas import tpu as pltpu


def _round_up(x, m):
    return ((x + m - 1) // m) * m


def _lycoris_kernel(x_ref, w_org_ref, d_ref, w_up_ref, o_ref, acc_ref):
    # x_ref     : VMEM (tm, tk)   bf16   row tile of the input
    # w_org_ref : VMEM (tn, tk)   bf16   tile of W_org in natural [out, in] layout
    # d_ref     : VMEM (tm, r_p)  bf16   precomputed d = x @ W_down.T (hoisted prepass)
    # w_up_ref  : VMEM (tn, r_p)  bf16   W_up (scale*multiplier folded in)
    # o_ref     : VMEM (tm, tn)   output tile
    # acc_ref   : VMEM (tm, tn)   f32 accumulator for h = x @ W_org.T
    k = pl.program_id(2)

    @pl.when(k == 0)
    def _init():
        acc_ref[...] = jnp.zeros_like(acc_ref)

    contract_last = (((1,), (1,)), ((), ()))  # contract last dim of both operands

    # Partial h: x[tm, tk] @ W_org[tn, tk]^T  -> [tm, tn], f32 accumulate.
    acc_ref[...] += lax.dot_general(
        x_ref[...], w_org_ref[...], dimension_numbers=contract_last,
        preferred_element_type=jnp.float32)

    @pl.when(k == pl.num_programs(2) - 1)
    def _finalize():
        # delta = d[tm, r_p] @ W_up[tn, r_p]^T   (scale*multiplier already in W_up)
        delta = lax.dot_general(
            d_ref[...], w_up_ref[...], dimension_numbers=contract_last,
            preferred_element_type=jnp.float32)
        o_ref[...] = (acc_ref[...] + delta).astype(o_ref.dtype)


def prepare_lycoris_weights(w_org, w_down, w_up, scale, multiplier, *,
                            tn=1024, tk=1024, compute_dtype=jnp.bfloat16):
    """One-time cast / pad / scale-fold of the weights (keep OUT of the hot path)."""
    d_out, d_in = w_org.shape
    r = w_down.shape[0]

    tn = _round_up(tn, 128)
    tk = _round_up(tk, 128)
    tn_e = min(tn, _round_up(d_out, 128))      # lane-dense output tile
    tk_e = min(tk, _round_up(d_in, 128))       # lane-dense reduction tile
    N_p = _round_up(d_out, tn_e)
    K_p = _round_up(d_in, tk_e)
    r_p = _round_up(max(r, 1), 128)            # lane-dense low-rank dim

    w_org_c = jnp.pad(w_org.astype(compute_dtype),
                      ((0, N_p - d_out), (0, K_p - d_in)))
    w_down_c = jnp.pad(w_down.astype(compute_dtype),
                       ((0, r_p - r), (0, K_p - d_in)))
    w_up_folded = (w_up.astype(jnp.float32) * (scale * multiplier)).astype(compute_dtype)
    w_up_c = jnp.pad(w_up_folded, ((0, N_p - d_out), (0, r_p - r)))

    return dict(w_org=w_org_c, w_down=w_down_c, w_up=w_up_c,
                d_out=d_out, d_in=d_in, r_p=r_p,
                tn_e=tn_e, tk_e=tk_e, N_p=N_p, K_p=K_p,
                compute_dtype=compute_dtype)


def lycoris_linear_forward(x, prepared, *, tm=512, out_dtype=None):
    """Fused Lycoris Linear forward.

    x:        [B, d_in]
    prepared: output of prepare_lycoris_weights (cast/padded/scale-folded weights)
    returns   [B, d_out] = x @ W_org.T + (scale*multiplier) * ((x @ W_down.T) @ W_up.T)
    """
    cd = prepared["compute_dtype"]
    d_out, d_in = prepared["d_out"], prepared["d_in"]
    tn_e, tk_e = prepared["tn_e"], prepared["tk_e"]
    N_p, K_p, r_p = prepared["N_p"], prepared["K_p"], prepared["r_p"]

    B, d_in_x = x.shape
    assert d_in_x == d_in, (d_in_x, d_in)
    out_dtype = x.dtype if out_dtype is None else out_dtype

    tm = _round_up(tm, 8)
    tm_e = min(tm, _round_up(B, 8))            # sublane dim: multiple of 8
    B_p = _round_up(B, tm_e)

    xc = x.astype(cd)
    if (B_p, K_p) != (B, d_in):
        xc = jnp.pad(xc, ((0, B_p - B), (0, K_p - d_in)))

    # ---- Prepass (hoisted out of the kernel's j loop): d = x @ W_down.T once per
    #      row, instead of once per (row-tile, out-tile) pair inside the kernel. ----
    d = lax.dot_general(
        xc, prepared["w_down"],
        dimension_numbers=(((1,), (1,)), ((), ())),
        preferred_element_type=jnp.float32).astype(cd)          # [B_p, r_p]

    grid = (B_p // tm_e, N_p // tn_e, K_p // tk_e)

    # ---- VMEM budget: double-buffered bf16 inputs + double-buffered output + f32 acc.
    isz = jnp.dtype(cd).itemsize
    osz = jnp.dtype(out_dtype).itemsize
    est = (2 * isz * (tm_e * tk_e + tn_e * tk_e + tm_e * r_p + tn_e * r_p)
           + 2 * osz * tm_e * tn_e
           + 4 * tm_e * tn_e)
    vmem_limit = int(max(32 << 20, min(2 * est + (8 << 20), 56 << 20)))

    flops = int(2 * B_p * N_p * K_p + 2 * B_p * N_p * r_p)
    bytes_accessed = int(isz * (B_p * K_p + N_p * K_p + B_p * r_p + N_p * r_p)
                         + osz * B_p * N_p)

    out_padded = pl.pallas_call(
        _lycoris_kernel,
        out_shape=jax.ShapeDtypeStruct((B_p, N_p), out_dtype),
        grid_spec=pltpu.PrefetchScalarGridSpec(
            num_scalar_prefetch=0,
            grid=grid,
            in_specs=[
                pl.BlockSpec((tm_e, tk_e), lambda i, j, k: (i, k)),   # x
                pl.BlockSpec((tn_e, tk_e), lambda i, j, k: (j, k)),   # W_org [out, in]
                pl.BlockSpec((tm_e, r_p), lambda i, j, k: (i, 0)),    # d = x @ W_down.T
                pl.BlockSpec((tn_e, r_p), lambda i, j, k: (j, 0)),    # W_up [out, r]
            ],
            out_specs=pl.BlockSpec((tm_e, tn_e), lambda i, j, k: (i, j)),
            scratch_shapes=[
                pltpu.VMEM((tm_e, tn_e), jnp.float32),                # acc for h
            ],
        ),
        compiler_params=pltpu.CompilerParams(
            dimension_semantics=("parallel", "parallel", "arbitrary"),
            vmem_limit_bytes=vmem_limit),
        cost_estimate=pl.CostEstimate(flops=flops, transcendentals=0,
                                      bytes_accessed=bytes_accessed),
    )(xc, prepared["w_org"], d, prepared["w_up"])

    return out_padded[:B, :d_out]


if __name__ == "__main__":
    # Small shapes consistent with the Linear branch of the module.
    batch, seq, d_in, d_out = 2, 8, 32, 32
    lycoris_dim = 4
    multiplier = 1.0
    alpha = 1.0
    trainable_scale = True

    key = jax.random.PRNGKey(0)
    k_x, k_org, k_down, k_up = jax.random.split(key, 4)

    # Input: [batch, seq, in_features] -> flatten leading dims for the kernel.
    x = jax.random.normal(k_x, (batch, seq, d_in), jnp.float32)
    x2d = x.reshape(batch * seq, d_in)

    # org_module = nn.Linear(d_in, d_out), kaiming_uniform(a=sqrt(5))
    #   -> uniform(-1/sqrt(fan_in), 1/sqrt(fan_in))
    bound = 1.0 / (d_in ** 0.5)
    w_org = jax.random.uniform(k_org, (d_out, d_in), jnp.float32,
                               minval=-bound, maxval=bound)
    # lycoris_down: kaiming_uniform(a=sqrt(5)); lycoris_up: zeros (module init).
    w_down = jax.random.uniform(k_down, (lycoris_dim, d_in), jnp.float32,
                                minval=-bound, maxval=bound)

    # trainable_scale=True -> scale is a parameter initialized to 1.0
    scale = 1.0 if trainable_scale else alpha / lycoris_dim

    def ref_forward(w_up_arr):
        # Plain-JAX reference mirroring the kernel's bf16-operand / f32-accumulate math.
        xf = x2d.astype(jnp.bfloat16).astype(jnp.float32)
        wof = w_org.astype(jnp.bfloat16).astype(jnp.float32)
        wdf = w_down.astype(jnp.bfloat16).astype(jnp.float32)
        wuf = (w_up_arr * (scale * multiplier)).astype(jnp.bfloat16).astype(jnp.float32)
        h = jnp.dot(xf, wof.T, preferred_element_type=jnp.float32)
        dd = jnp.dot(xf, wdf.T, preferred_element_type=jnp.float32)
        dd = dd.astype(jnp.bfloat16).astype(jnp.float32)
        return (h + jnp.dot(dd, wuf.T, preferred_element_type=jnp.float32)
                ).reshape(batch, seq, d_out)

    # (1) module-faithful init (lycoris_up zero-initialized);
    # (2) a non-zero W_up to actually exercise the low-rank delta path.
    all_ok = True
    for w_up in (jnp.zeros((d_out, lycoris_dim), jnp.float32),
                 jax.random.normal(k_up, (d_out, lycoris_dim), jnp.float32) * 0.1):
        prepared = prepare_lycoris_weights(w_org, w_down, w_up, scale, multiplier)
        out2d = lycoris_linear_forward(x2d, prepared)
        out = out2d.reshape(batch, seq, d_out)
        jax.block_until_ready(out)
        ref = ref_forward(w_up)
        ok = bool(jnp.allclose(out.astype(jnp.float32), ref, atol=2e-2, rtol=2e-2))
        if not ok:
            err = float(jnp.max(jnp.abs(out.astype(jnp.float32) - ref)))
            raise AssertionError(f"max abs error {err}")
        all_ok = all_ok and ok

    assert all_ok
    print("KERNEL_OK")
</pallas_src>

<mosaic_0001>
module attributes {stable_mosaic.version = 11 : i64} {
  func.func @_lycoris_kernel(%arg0: i32, %arg1: i32, %arg2: i32, %arg3: memref<16x128xbf16, #tpu.memory_space<vmem>>, %arg4: memref<128x128xbf16, #tpu.memory_space<vmem>>, %arg5: memref<16x128xbf16, #tpu.memory_space<vmem>>, %arg6: memref<128x128xbf16, #tpu.memory_space<vmem>>, %arg7: memref<16x128xf32, #tpu.memory_space<vmem>>, %arg8: memref<16x128xf32, #tpu.memory_space<vmem>>) attributes {dimension_semantics = [#tpu.dimension_semantics<parallel>, #tpu.dimension_semantics<parallel>, #tpu.dimension_semantics<arbitrary>], iteration_bounds = array<i64: 1, 1, 1>, scalar_prefetch = 0 : i64, scratch_operands = 1 : i64, tpu.core_type = #tpu.core_type<tc>, window_params = [{transform_indices = @transform_0, window_bounds = array<i64: 16, 128>}, {transform_indices = @transform_1, window_bounds = array<i64: 128, 128>}, {transform_indices = @transform_2, window_bounds = array<i64: 16, 128>}, {transform_indices = @transform_3, window_bounds = array<i64: 128, 128>}, {transform_indices = @transform_4, window_bounds = array<i64: 16, 128>}]} {
    %c0_i32 = arith.constant 0 : i32
    %0 = arith.cmpi eq, %arg2, %c0_i32 : i32
    %1 = arith.extui %0 : i1 to i32
    %c0_i32_0 = arith.constant 0 : i32
    %2 = arith.cmpi ne, %1, %c0_i32_0 : i32
    scf.if %2 {
      %cst_10 = arith.constant 0.000000e+00 : f32
      %12 = vector.broadcast %cst_10 : f32 to vector<16x128xf32>
      %c0_11 = arith.constant 0 : index
      %c0_12 = arith.constant 0 : index
      %13 = vector.load %arg8[%c0_11, %c0_12] : memref<16x128xf32, #tpu.memory_space<vmem>>, vector<16x128xf32>
      tpu.vector_store %arg8[%c0_11, %c0_12], %12 {strides = array<i32>} : memref<16x128xf32, #tpu.memory_space<vmem>>, vector<16x128xf32>,
    } else {
    }
    %c0 = arith.constant 0 : index
    %c0_1 = arith.constant 0 : index
    %3 = vector.load %arg8[%c0, %c0_1] : memref<16x128xf32, #tpu.memory_space<vmem>>, vector<16x128xf32>
    %c0_2 = arith.constant 0 : index
    %c0_3 = arith.constant 0 : index
    %4 = vector.load %arg3[%c0_2, %c0_3] : memref<16x128xbf16, #tpu.memory_space<vmem>>, vector<16x128xbf16>
    %c0_4 = arith.constant 0 : index
    %c0_5 = arith.constant 0 : index
    %5 = vector.load %arg4[%c0_4, %c0_5] : memref<128x128xbf16, #tpu.memory_space<vmem>>, vector<128x128xbf16>
    %cst = arith.constant dense<0.000000e+00> : vector<16x128xf32>
    %6 = tpu.matmul %4, %5, %cst {dimension_numbers = #tpu.dot_dimension_numbers<[1], [1], [0], [0], [0, 0, 1, 0], [], []>} : vector<16x128xbf16>, vector<128x128xbf16>, vector<16x128xf32> -> vector<16x128xf32>
    %7 = arith.addf %3, %6 : vector<16x128xf32>
    %c0_6 = arith.constant 0 : index
    %c0_7 = arith.constant 0 : index
    %8 = vector.load %arg8[%c0_6, %c0_7] : memref<16x128xf32, #tpu.memory_space<vmem>>, vector<16x128xf32>
    tpu.vector_store %arg8[%c0_6, %c0_7], %7 {strides = array<i32>} : memref<16x128xf32, #tpu.memory_space<vmem>>, vector<16x128xf32>,
    %c0_i32_8 = arith.constant 0 : i32
    %9 = arith.cmpi eq, %arg2, %c0_i32_8 : i32
    %10 = arith.extui %9 : i1 to i32
    %c0_i32_9 = arith.constant 0 : i32
    %11 = arith.cmpi ne, %10, %c0_i32_9 : i32
    scf.if %11 {
      %c0_10 = arith.constant 0 : index
      %c0_11 = arith.constant 0 : index
      %12 = vector.load %arg5[%c0_10, %c0_11] : memref<16x128xbf16, #tpu.memory_space<vmem>>, vector<16x128xbf16>
      %c0_12 = arith.constant 0 : index
      %c0_13 = arith.constant 0 : index
      %13 = vector.load %arg6[%c0_12, %c0_13] : memref<128x128xbf16, #tpu.memory_space<vmem>>, vector<128x128xbf16>
      %cst_14 = arith.constant dense<0.000000e+00> : vector<16x128xf32>
      %14 = tpu.matmul %12, %13, %cst_14 {dimension_numbers = #tpu.dot_dimension_numbers<[1], [1], [0], [0], [0, 0, 1, 0], [], []>} : vector<16x128xbf16>, vector<128x128xbf16>, vector<16x128xf32> -> vector<16x128xf32>
      %c0_15 = arith.constant 0 : index
      %c0_16 = arith.constant 0 : index
      %15 = vector.load %arg8[%c0_15, %c0_16] : memref<16x128xf32, #tpu.memory_space<vmem>>, vector<16x128xf32>
      %16 = arith.addf %15, %14 : vector<16x128xf32>
      %c0_17 = arith.constant 0 : index
      %c0_18 = arith.constant 0 : index
      %17 = vector.load %arg7[%c0_17, %c0_18] : memref<16x128xf32, #tpu.memory_space<vmem>>, vector<16x128xf32>
      tpu.vector_store %arg7[%c0_17, %c0_18], %16 {strides = array<i32>} : memref<16x128xf32, #tpu.memory_space<vmem>>, vector<16x128xf32>,
    } else {
    }
    return
  }
  func.func @transform_0(%arg0: i32, %arg1: i32, %arg2: i32) -> (i32, i32) {
    %c0_i32 = arith.constant 0 : i32
    return %arg0, %arg2 : i32, i32
  }
  func.func @transform_1(%arg0: i32, %arg1: i32, %arg2: i32) -> (i32, i32) {
    %c0_i32 = arith.constant 0 : i32
    return %arg1, %arg2 : i32, i32
  }
  func.func @transform_2(%arg0: i32, %arg1: i32, %arg2: i32) -> (i32, i32) {
    %c0_i32 = arith.constant 0 : i32
    %c0_i32_0 = arith.constant 0 : i32
    return %arg0, %c0_i32 : i32, i32
  }
  func.func @transform_3(%arg0: i32, %arg1: i32, %arg2: i32) -> (i32, i32) {
    %c0_i32 = arith.constant 0 : i32
    %c0_i32_0 = arith.constant 0 : i32
    return %arg1, %c0_i32 : i32, i32
  }
  func.func @transform_4(%arg0: i32, %arg1: i32, %arg2: i32) -> (i32, i32) {
    %c0_i32 = arith.constant 0 : i32
    return %arg0, %arg1 : i32, i32
  }
}

</mosaic_0001>

<bundles_post_ra>
// kernel: tpu_custom_call.1
= control target key start
LH: loop header
LB: loop body
LE: loop exit
PB: predicated region body
PF: predicated region fallthrough
CT: control target
= control target key end

     0   :  { %9 = vsyncpa [#allocation4], 0  ;;  %s571_s0 = inlined_call_operand.hbm [shape: bf16[16,128], index: 0, kind: input, shape index: {}]   ;;  %s572_s1 = inlined_call_operand.hbm [shape: bf16[128,128], index: 1, kind: input, shape index: {}]   ;;  %s573_s2 = inlined_call_operand.hbm [shape: bf16[16,128], index: 2, kind: input, shape index: {}]   ;;  %s574_s3 = inlined_call_operand.hbm [shape: bf16[128,128], index: 3, kind: input, shape index: {}]   ;;  %s575_s4 = inlined_call_operand.hbm [shape: f32[16,128], index: 4, kind: output, shape index: {}]  }
   0x1   :  { %10 = vsyncpa [#allocation7], 0 }
   0x2   :  { %11 = vsyncpa [#allocation10], 0 }
   0x3   :  { %12 = vsyncpa [#allocation5], 0  ;;  %s30_s17 = sshll.u32 %s572_s1, 4  ;;  %s522_s18 = smov [#allocation6]   ;;  %s31_s17 = int_to_ptr.hbm [resolvable:$true] %s30_s17 }
   0x4   :  { %s32_s19 = sshll.u32 %s522_s18, 4  ;;  %s17_s22 = sshll.u32 %s571_s0, 4  ;;  %s33_s19 = int_to_ptr.vmem [resolvable:$true] %s32_s19  ;;  %s18_s22 = int_to_ptr.hbm [resolvable:$true] %s17_s22 }
   0x5   :  { %s523_s23 = smov 64   ;;  %s524_s24 = smov 4  }
   0x6   :  { %38 = dma.hbm_to_vmem [thread:$0]  %s31_s17, 1024, %s33_s19, [#allocation7], %s523_s23, %s523_s23, %s524_s24  }
   0x7   :  { %s525_s25 = smov [#allocation3]   ;;  %s43_s29 = sshll.u32 %s573_s2, 4  ;;  %s44_s29 = int_to_ptr.hbm [resolvable:$true] %s43_s29 }
   0x8   :  { %s19_s26 = sshll.u32 %s525_s25, 4  ;;  %s56_s5 = sshll.u32 %s574_s3, 4  ;;  %s20_s26 = int_to_ptr.vmem [resolvable:$true] %s19_s26  ;;  %s57_s5 = int_to_ptr.hbm [resolvable:$true] %s56_s5 }
   0x9   :  { %25 = dma.hbm_to_vmem [thread:$0]  %s18_s22, 128, %s20_s26, [#allocation4], %s523_s23, %s523_s23, %s524_s24  }
   0xa   :  { %s526_s6 = smov [#allocation8]   ;;  %s527_s0 = smov [#allocation9]  }
   0xb   :  { %s45_s7 = sshll.u32 %s526_s6, 4  ;;  %s58_s8 = sshll.u32 %s527_s0, 4  ;;  %s46_s7 = int_to_ptr.vmem [resolvable:$true] %s45_s7  ;;  %s59_s8 = int_to_ptr.vmem [resolvable:$true] %s58_s8 }
   0xc   :  { %51 = dma.hbm_to_vmem [thread:$0]  %s44_s29, 128, %s46_s7, [#allocation7], %s523_s23, %s523_s23, %s524_s24  }
   0xd   :  { %64 = dma.hbm_to_vmem [thread:$0]  %s57_s5, 1024, %s59_s8, [#allocation10], %s523_s23, %s523_s23, %s524_s24  }
   0xe   :  { %514 = dma.done.wait [#allocation4], 128  }
   0xf   :  { %515 = vsyncadd [#allocation4], 4294967168 }
  0x10   :  { %516 = dma.done.wait [#allocation7], 1152  }
  0x11   :  { %517 = vsyncadd [#allocation7], 4294966144 }
  0x12   :  { %518 = dma.done.wait [#allocation10], 1024  }
  0x13   :  { %519 = vsyncadd [#allocation10], 4294966272  ;;  %v375_v0 = vld [vmem:[#allocation6 + $0x38] sm:$0xff]  ;;  %v384_v1 = vld [vmem:[#allocation9 + $0x38] sm:$0xff]  ;;  %s528_s2 = smov [#allocation11]   ;;  %s280_s11 = sshll.u32 %s575_s4, 4  ;;  %s281_s11 = int_to_ptr.hbm [resolvable:$true] %s280_s11 }
  0x14   :  { %161 = vmatpush.bf16.xpose.msra.mxu0 %v375_v0  ;;  %254 = vmatpush.bf16.xpose.msra.mxu1 %v384_v1  ;;  %v374_v2 = vld [vmem:[#allocation6 + $0x30] sm:$0xff]  ;;  %v383_v3 = vld [vmem:[#allocation9 + $0x30] sm:$0xff]  ;;  %v373_v4 = vld [vmem:[#allocation6 + $0x28] sm:$0xff]  ;;  %s278_s3 = sshll.u32 %s528_s2, 4  ;;  %s529_s12 = smov 128   ;;  %s279_s3 = int_to_ptr.vmem [resolvable:$true] %s278_s3 }
  0x15   :  { %v382_v5 = vld [vmem:[#allocation9 + $0x28] sm:$0xff]  ;;  %v372_v6 = vld [vmem:[#allocation6 + $0x20] sm:$0xff]  ;;  %v381_v7 = vld [vmem:[#allocation9 + $0x20] sm:$0xff]  ;;  %s530_s13 = smov 8  }
  0x16   :  { %v371_v8 = vld [vmem:[#allocation6 + $0x18] sm:$0xff]  ;;  %v380_v9 = vld [vmem:[#allocation9 + $0x18] sm:$0xff]  ;;  %v370_v10 = vld [vmem:[#allocation6 + $0x10] sm:$0xff] }
  0x17   :  { %v379_v11 = vld [vmem:[#allocation9 + $0x10] sm:$0xff]  ;;  %v369_v12 = vld [vmem:[#allocation6 + $0x8] sm:$0xff]  ;;  %v378_v13 = vld [vmem:[#allocation9 + $0x8] sm:$0xff] }
  0x18   :  { %v368_v14 = vld [vmem:[#allocation6] sm:$0xff]  ;;  %v377_v15 = vld [vmem:[#allocation9] sm:$0xff]  ;;  %v367_v16 = vld [vmem:[#allocation3] sm:$0xff] }
  0x19   :  { %v376_v17 = vld [vmem:[#allocation8] sm:$0xff] }
  0x1c   :  { %162 = vmatpush.bf16.xpose.msra.mxu0 %v374_v2  ;;  %255 = vmatpush.bf16.xpose.msra.mxu1 %v383_v3 }
  0x24   :  { %163 = vmatpush.bf16.xpose.msra.mxu0 %v373_v4  ;;  %256 = vmatpush.bf16.xpose.msra.mxu1 %v382_v5 }
  0x2c   :  { %164 = vmatpush.bf16.xpose.msra.mxu0 %v372_v6  ;;  %257 = vmatpush.bf16.xpose.msra.mxu1 %v381_v7 }
  0x34   :  { %165 = vmatpush.bf16.xpose.msra.mxu0 %v371_v8  ;;  %258 = vmatpush.bf16.xpose.msra.mxu1 %v380_v9 }
  0x3c   :  { %166 = vmatpush.bf16.xpose.msra.mxu0 %v370_v10  ;;  %259 = vmatpush.bf16.xpose.msra.mxu1 %v379_v11 }
  0x44   :  { %167 = vmatpush.bf16.xpose.msra.mxu0 %v369_v12  ;;  %260 = vmatpush.bf16.xpose.msra.mxu1 %v378_v13 }
  0x4c   :  { %168 = vmatpush.bf16.xpose.msra.mxu0 %v368_v14  ;;  %261 = vmatpush.bf16.xpose.msra.mxu1 %v377_v15 }
  0x53   :  { %169 = vmatmul.bf16.vlgmr.msra.gmra.mxu0 %v367_v16  ;;  %262 = vmatmul.bf16.vlgmr.msra.gmra.mxu1 %v376_v17 }
  0xd0   :  { %v170_v18 = vpop.f32.mrf.mxu0  ;;  %v263_v19 = vpop.f32.mrf.mxu1 }
  0xd1   :  { %v270_v20 = vadd.f32 %v263_v19, %v170_v18 }
  0xd3   :  { %272 = vst [vmem:[#allocation11] sm:$0xff] %v270_v20 }
  0xd8   :  { %v172_v21 = vpop.f32.mrf.mxu0  ;;  %v265_v22 = vpop.f32.mrf.mxu1 }
  0xd9   :  { %v271_v23 = vadd.f32 %v265_v22, %v172_v21 }
  0xdb   :  { %273 = vst [vmem:[#allocation11 + $0x8] sm:$0xff] %v271_v23 }
  0xdc   :  { %286 = dma.vmem_to_hbm [thread:$0]  %s279_s3, 256, %s281_s11, [#allocation5], %s529_s12, %s529_s12, %s530_s13  }
  0xdd   :  { %520 = dma.done.wait [#allocation5], 256  }
  0xde   :  { %521 = vsyncadd [#allocation5], 4294967040 }
  0xdf   :  { %291 = vsyncpa [#allocation4], 1 }
  0xe0   :  { %292 = vsyncpa [#allocation7], 1 }
  0xe1   :  { %293 = vsyncpa [#allocation10], 1 }
  0xe2   :  { %294 = vsyncpa [#allocation5], 1 }

</bundles_post_ra>
